<compile_context>
chip_gen: v5e
topology: v5e:2x2
jax: 0.10.0
libtpu: 0.0.40
codegen_flags: <defaults>
</compile_context>

<pallas_src>
import jax
import jax.numpy as jnp
from jax.experimental import pallas as pl
from jax.experimental.pallas import tpu as pltpu

LANE = 128          # vreg lane width / MXU alignment
TILE_B = 128        # batch rows per grid step (128-aligned for v5e's 128x128 MXU)


def _round_up(n, m):
    return pl.cdiv(n, m) * m


def mlp_kernel(x_ref, w1_ref, b1_ref, w2_ref, b2_ref, w3_ref, b3_ref, o_ref):
    # fc1 + relu  (bf16 x bf16 -> f32 accumulate on the MXU)
    h = jnp.dot(x_ref[...], w1_ref[...], preferred_element_type=jnp.float32)
    h = jnp.maximum(h + b1_ref[...], 0.0).astype(jnp.bfloat16)
    # fc2 + relu
    h = jnp.dot(h, w2_ref[...], preferred_element_type=jnp.float32)
    h = jnp.maximum(h + b2_ref[...], 0.0).astype(jnp.bfloat16)
    # fc3 + relu (final relu per the PyTorch forward)
    h = jnp.dot(h, w3_ref[...], preferred_element_type=jnp.float32)
    o_ref[...] = jnp.maximum(h + b3_ref[...], 0.0)


def mlp_forward(x, w1, b1, w2, b2, w3, b3, *, tile_b=TILE_B):
    B, F_in = x.shape
    H = w1.shape[1]
    C = w3.shape[1]

    # Pad every feature dim up to a lane multiple (128) and batch to tile_b.
    Fp = _round_up(F_in, LANE)
    Hp = _round_up(H, LANE)
    Cp = _round_up(C, LANE)
    Bp = _round_up(B, tile_b)

    # Zero-padding is semantics-preserving: padded input columns multiply
    # zero weight rows, padded output columns get zero weight/bias, and padded
    # batch rows are sliced away at the end.
    xp = jnp.pad(x, ((0, Bp - B), (0, Fp - F_in))).astype(jnp.bfloat16)
    w1p = jnp.pad(w1, ((0, Fp - F_in), (0, Hp - H))).astype(jnp.bfloat16)
    w2p = jnp.pad(w2, ((0, Hp - H), (0, Hp - H))).astype(jnp.bfloat16)
    w3p = jnp.pad(w3, ((0, Hp - H), (0, Cp - C))).astype(jnp.bfloat16)
    b1p = jnp.pad(b1, ((0, 0), (0, Hp - H))).astype(jnp.float32)
    b2p = jnp.pad(b2, ((0, 0), (0, Hp - H))).astype(jnp.float32)
    b3p = jnp.pad(b3, ((0, 0), (0, Cp - C))).astype(jnp.float32)

    grid = (Bp // tile_b,)

    cost = pl.CostEstimate(
        flops=2 * Bp * (Fp * Hp + Hp * Hp + Hp * Cp),
        transcendentals=0,
        bytes_accessed=(xp.size * 2 + (w1p.size + w2p.size + w3p.size) * 2
                        + (b1p.size + b2p.size + b3p.size) * 4
                        + Bp * Cp * 4),
    )

    out = pl.pallas_call(
        mlp_kernel,
        out_shape=jax.ShapeDtypeStruct((Bp, Cp), jnp.float32),
        grid=grid,
        in_specs=[
            pl.BlockSpec((tile_b, Fp), lambda i: (i, 0)),   # x: streamed per tile
            pl.BlockSpec((Fp, Hp), lambda i: (0, 0)),       # w1: VMEM-resident
            pl.BlockSpec((1, Hp), lambda i: (0, 0)),        # b1
            pl.BlockSpec((Hp, Hp), lambda i: (0, 0)),       # w2
            pl.BlockSpec((1, Hp), lambda i: (0, 0)),        # b2
            pl.BlockSpec((Hp, Cp), lambda i: (0, 0)),       # w3
            pl.BlockSpec((1, Cp), lambda i: (0, 0)),        # b3
        ],
        out_specs=pl.BlockSpec((tile_b, Cp), lambda i: (i, 0)),
        compiler_params=pltpu.CompilerParams(
            dimension_semantics=("parallel",),
        ),
        cost_estimate=cost,
    )(xp, w1p, b1p, w2p, b2p, w3p, b3p)

    return out[:B, :C]


def init_linear(key, fan_in, fan_out):
    # PyTorch nn.Linear default init: U(-1/sqrt(fan_in), 1/sqrt(fan_in))
    kw, kb = jax.random.split(key)
    bound = 1.0 / jnp.sqrt(fan_in)
    w = jax.random.uniform(kw, (fan_in, fan_out), jnp.float32, -bound, bound)
    b = jax.random.uniform(kb, (1, fan_out), jnp.float32, -bound, bound)
    return w, b


def reference(x, w1, b1, w2, b2, w3, b3):
    # Mirrors the kernel's bf16-operand / f32-accumulate arithmetic so the
    # comparison tolerance can stay tight.
    def lin(h, w, b):
        return jnp.dot(h.astype(jnp.bfloat16).astype(jnp.float32),
                       w.astype(jnp.bfloat16).astype(jnp.float32),
                       precision=jax.lax.Precision.HIGHEST) + b
    h = jax.nn.relu(lin(x, w1, b1))
    h = jax.nn.relu(lin(h, w2, b2))
    return jax.nn.relu(lin(h, w3, b3))


if __name__ == "__main__":
    # Net(num_classes, input_size, hidden_size, num_layers) — num_layers is
    # unused by the PyTorch forward pass, so it is ignored here.
    batch, input_size, hidden_size, num_classes = 8, 32, 32, 16

    key = jax.random.PRNGKey(0)
    kx, k1, k2, k3 = jax.random.split(key, 4)
    x = jax.random.normal(kx, (batch, input_size), jnp.float32)
    w1, b1 = init_linear(k1, input_size, hidden_size)
    w2, b2 = init_linear(k2, hidden_size, hidden_size)
    w3, b3 = init_linear(k3, hidden_size, num_classes)

    out = mlp_forward(x, w1, b1, w2, b2, w3, b3)
    out = jax.block_until_ready(out)

    ref = reference(x, w1, b1, w2, b2, w3, b3)
    assert out.shape == (batch, num_classes)
    assert out.dtype == jnp.float32
    assert jnp.allclose(out, ref, atol=1e-4, rtol=1e-4), (
        float(jnp.max(jnp.abs(out - ref))))
    print("KERNEL_OK")
</pallas_src>

<mosaic_0001>
module attributes {stable_mosaic.version = 11 : i64} {
  func.func @mlp_kernel(%arg0: i32, %arg1: memref<128x128xbf16, #tpu.memory_space<vmem>>, %arg2: memref<128x128xbf16, #tpu.memory_space<vmem>>, %arg3: memref<1x128xf32, #tpu.memory_space<vmem>>, %arg4: memref<128x128xbf16, #tpu.memory_space<vmem>>, %arg5: memref<1x128xf32, #tpu.memory_space<vmem>>, %arg6: memref<128x128xbf16, #tpu.memory_space<vmem>>, %arg7: memref<1x128xf32, #tpu.memory_space<vmem>>, %arg8: memref<128x128xf32, #tpu.memory_space<vmem>>) attributes {dimension_semantics = [#tpu.dimension_semantics<parallel>], iteration_bounds = array<i64: 1>, scalar_prefetch = 0 : i64, scratch_operands = 0 : i64, tpu.core_type = #tpu.core_type<tc>, window_params = [{transform_indices = @transform_0, window_bounds = array<i64: 128, 128>}, {pipeline_mode = #tpu.pipeline_mode<synchronous>, transform_indices = @transform_1, window_bounds = array<i64: 128, 128>}, {pipeline_mode = #tpu.pipeline_mode<synchronous>, transform_indices = @transform_2, window_bounds = array<i64: 1, 128>}, {pipeline_mode = #tpu.pipeline_mode<synchronous>, transform_indices = @transform_3, window_bounds = array<i64: 128, 128>}, {pipeline_mode = #tpu.pipeline_mode<synchronous>, transform_indices = @transform_4, window_bounds = array<i64: 1, 128>}, {pipeline_mode = #tpu.pipeline_mode<synchronous>, transform_indices = @transform_5, window_bounds = array<i64: 128, 128>}, {pipeline_mode = #tpu.pipeline_mode<synchronous>, transform_indices = @transform_6, window_bounds = array<i64: 1, 128>}, {transform_indices = @transform_7, window_bounds = array<i64: 128, 128>}]} {
    %c0 = arith.constant 0 : index
    %c0_0 = arith.constant 0 : index
    %0 = vector.load %arg1[%c0, %c0_0] : memref<128x128xbf16, #tpu.memory_space<vmem>>, vector<128x128xbf16>
    %c0_1 = arith.constant 0 : index
    %c0_2 = arith.constant 0 : index
    %1 = vector.load %arg2[%c0_1, %c0_2] : memref<128x128xbf16, #tpu.memory_space<vmem>>, vector<128x128xbf16>
    %cst = arith.constant dense<0.000000e+00> : vector<128x128xf32>
    %2 = tpu.matmul %0, %1, %cst {dimension_numbers = #tpu.dot_dimension_numbers<[1], [0], [0], [1], [0, 0, 1, 1], [], []>} : vector<128x128xbf16>, vector<128x128xbf16>, vector<128x128xf32> -> vector<128x128xf32>
    %c0_3 = arith.constant 0 : index
    %c0_4 = arith.constant 0 : index
    %3 = vector.load %arg3[%c0_3, %c0_4] : memref<1x128xf32, #tpu.memory_space<vmem>>, vector<1x128xf32>
    %4 = vector.broadcast %3 : vector<1x128xf32> to vector<128x128xf32>
    %5 = arith.addf %2, %4 : vector<128x128xf32>
    %cst_5 = arith.constant 0.000000e+00 : f32
    %6 = vector.broadcast %cst_5 : f32 to vector<128x128xf32>
    %7 = arith.maximumf %5, %6 : vector<128x128xf32>
    %8 = arith.truncf %7 : vector<128x128xf32> to vector<128x128xbf16>
    %c0_6 = arith.constant 0 : index
    %c0_7 = arith.constant 0 : index
    %9 = vector.load %arg4[%c0_6, %c0_7] : memref<128x128xbf16, #tpu.memory_space<vmem>>, vector<128x128xbf16>
    %cst_8 = arith.constant dense<0.000000e+00> : vector<128x128xf32>
    %10 = tpu.matmul %8, %9, %cst_8 {dimension_numbers = #tpu.dot_dimension_numbers<[1], [0], [0], [1], [0, 0, 1, 1], [], []>} : vector<128x128xbf16>, vector<128x128xbf16>, vector<128x128xf32> -> vector<128x128xf32>
    %c0_9 = arith.constant 0 : index
    %c0_10 = arith.constant 0 : index
    %11 = vector.load %arg5[%c0_9, %c0_10] : memref<1x128xf32, #tpu.memory_space<vmem>>, vector<1x128xf32>
    %12 = vector.broadcast %11 : vector<1x128xf32> to vector<128x128xf32>
    %13 = arith.addf %10, %12 : vector<128x128xf32>
    %cst_11 = arith.constant 0.000000e+00 : f32
    %14 = vector.broadcast %cst_11 : f32 to vector<128x128xf32>
    %15 = arith.maximumf %13, %14 : vector<128x128xf32>
    %16 = arith.truncf %15 : vector<128x128xf32> to vector<128x128xbf16>
    %c0_12 = arith.constant 0 : index
    %c0_13 = arith.constant 0 : index
    %17 = vector.load %arg6[%c0_12, %c0_13] : memref<128x128xbf16, #tpu.memory_space<vmem>>, vector<128x128xbf16>
    %cst_14 = arith.constant dense<0.000000e+00> : vector<128x128xf32>
    %18 = tpu.matmul %16, %17, %cst_14 {dimension_numbers = #tpu.dot_dimension_numbers<[1], [0], [0], [1], [0, 0, 1, 1], [], []>} : vector<128x128xbf16>, vector<128x128xbf16>, vector<128x128xf32> -> vector<128x128xf32>
    %c0_15 = arith.constant 0 : index
    %c0_16 = arith.constant 0 : index
    %19 = vector.load %arg7[%c0_15, %c0_16] : memref<1x128xf32, #tpu.memory_space<vmem>>, vector<1x128xf32>
    %20 = vector.broadcast %19 : vector<1x128xf32> to vector<128x128xf32>
    %21 = arith.addf %18, %20 : vector<128x128xf32>
    %cst_17 = arith.constant 0.000000e+00 : f32
    %22 = vector.broadcast %cst_17 : f32 to vector<128x128xf32>
    %23 = arith.maximumf %21, %22 : vector<128x128xf32>
    %c0_18 = arith.constant 0 : index
    %c0_19 = arith.constant 0 : index
    %24 = vector.load %arg8[%c0_18, %c0_19] : memref<128x128xf32, #tpu.memory_space<vmem>>, vector<128x128xf32>
    tpu.vector_store %arg8[%c0_18, %c0_19], %23 {strides = array<i32>} : memref<128x128xf32, #tpu.memory_space<vmem>>, vector<128x128xf32>,
    return
  }
  func.func @transform_0(%arg0: i32) -> (i32, i32) {
    %c0_i32 = arith.constant 0 : i32
    %c0_i32_0 = arith.constant 0 : i32
    return %arg0, %c0_i32 : i32, i32
  }
  func.func @transform_1(%arg0: i32) -> (i32, i32) {
    %c0_i32 = arith.constant 0 : i32
    %c0_i32_0 = arith.constant 0 : i32
    %c0_i32_1 = arith.constant 0 : i32
    return %c0_i32, %c0_i32_0 : i32, i32
  }
  func.func @transform_2(%arg0: i32) -> (i32, i32) {
    %c0_i32 = arith.constant 0 : i32
    %c0_i32_0 = arith.constant 0 : i32
    %c0_i32_1 = arith.constant 0 : i32
    return %c0_i32, %c0_i32_0 : i32, i32
  }
  func.func @transform_3(%arg0: i32) -> (i32, i32) {
    %c0_i32 = arith.constant 0 : i32
    %c0_i32_0 = arith.constant 0 : i32
    %c0_i32_1 = arith.constant 0 : i32
    return %c0_i32, %c0_i32_0 : i32, i32
  }
  func.func @transform_4(%arg0: i32) -> (i32, i32) {
    %c0_i32 = arith.constant 0 : i32
    %c0_i32_0 = arith.constant 0 : i32
    %c0_i32_1 = arith.constant 0 : i32
    return %c0_i32, %c0_i32_0 : i32, i32
  }
  func.func @transform_5(%arg0: i32) -> (i32, i32) {
    %c0_i32 = arith.constant 0 : i32
    %c0_i32_0 = arith.constant 0 : i32
    %c0_i32_1 = arith.constant 0 : i32
    return %c0_i32, %c0_i32_0 : i32, i32
  }
  func.func @transform_6(%arg0: i32) -> (i32, i32) {
    %c0_i32 = arith.constant 0 : i32
    %c0_i32_0 = arith.constant 0 : i32
    %c0_i32_1 = arith.constant 0 : i32
    return %c0_i32, %c0_i32_0 : i32, i32
  }
  func.func @transform_7(%arg0: i32) -> (i32, i32) {
    %c0_i32 = arith.constant 0 : i32
    %c0_i32_0 = arith.constant 0 : i32
    return %arg0, %c0_i32 : i32, i32
  }
}

</mosaic_0001>

<bundles_post_ra>
// kernel: tpu_custom_call.1
= control target key start
LH: loop header
LB: loop body
LE: loop exit
PB: predicated region body
PF: predicated region fallthrough
CT: control target
= control target key end

     0   :  { %12 = vsyncpa [#allocation3], 0  ;;  %s1039_s0 = inlined_call_operand.hbm [shape: bf16[128,128], index: 0, kind: input, shape index: {}]   ;;  %s1040_s1 = inlined_call_operand.hbm [shape: bf16[128,128], index: 1, kind: input, shape index: {}]   ;;  %s1041_s2 = inlined_call_operand.vmem [shape: f32[1,128], index: 2, kind: input, shape index: {}]   ;;  %s1042_s3 = inlined_call_operand.hbm [shape: bf16[128,128], index: 3, kind: input, shape index: {}]   ;;  %s1043_s4 = inlined_call_operand.vmem [shape: f32[1,128], index: 4, kind: input, shape index: {}]   ;;  %s1044_s5 = inlined_call_operand.hbm [shape: bf16[128,128], index: 5, kind: input, shape index: {}]   ;;  %s1045_s6 = inlined_call_operand.vmem [shape: f32[1,128], index: 6, kind: input, shape index: {}]   ;;  %s1046_s7 = inlined_call_operand.hbm [shape: f32[128,128], index: 7, kind: output, shape index: {}]  }
   0x1   :  { %13 = vsyncpa [#allocation6], 0 }
   0x2   :  { %14 = vsyncpa [#allocation9], 0 }
   0x3   :  { %15 = vsyncpa [#allocation4], 0  ;;  %s33_s26 = sshll.u32 %s1040_s1, 4  ;;  %s930_s27 = smov [#allocation5]   ;;  %s34_s26 = int_to_ptr.hbm [resolvable:$true] %s33_s26 }
   0x4   :  { %s35_s28 = sshll.u32 %s930_s27, 4  ;;  %s20_s8 = sshll.u32 %s1039_s0, 4  ;;  %s36_s28 = int_to_ptr.vmem [resolvable:$true] %s35_s28  ;;  %s21_s8 = int_to_ptr.hbm [resolvable:$true] %s20_s8 }
   0x5   :  { %s931_s9 = smov 64   ;;  %s932_s10 = smov 4  }
   0x6   :  { %41 = dma.hbm_to_vmem [thread:$0]  %s34_s26, 1024, %s36_s28, [#allocation6], %s931_s9, %s931_s9, %s932_s10  }
   0x7   :  { %s933_s11 = smov [#allocation2]   ;;  %s48_s15 = sshll.u32 %s1042_s3, 4  ;;  %s49_s15 = int_to_ptr.hbm [resolvable:$true] %s48_s15 }
   0x8   :  { %s22_s12 = sshll.u32 %s933_s11, 4  ;;  %s63_s17 = sshll.u32 %s1044_s5, 4  ;;  %s23_s12 = int_to_ptr.vmem [resolvable:$true] %s22_s12  ;;  %s64_s17 = int_to_ptr.hbm [resolvable:$true] %s63_s17 }
   0x9   :  { %28 = dma.hbm_to_vmem [thread:$0]  %s21_s8, 1024, %s23_s12, [#allocation3], %s931_s9, %s931_s9, %s932_s10  }
   0xa   :  { %s934_s18 = smov [#allocation7]   ;;  %s935_s0 = smov [#allocation8]  }
   0xb   :  { %s50_s19 = sshll.u32 %s934_s18, 4  ;;  %s65_s20 = sshll.u32 %s935_s0, 4  ;;  %s51_s19 = int_to_ptr.vmem [resolvable:$true] %s50_s19  ;;  %s66_s20 = int_to_ptr.vmem [resolvable:$true] %s65_s20 }
   0xc   :  { %56 = dma.hbm_to_vmem [thread:$0]  %s49_s15, 1024, %s51_s19, [#allocation6], %s931_s9, %s931_s9, %s932_s10  }
   0xd   :  { %71 = dma.hbm_to_vmem [thread:$0]  %s64_s17, 1024, %s66_s20, [#allocation9], %s931_s9, %s931_s9, %s932_s10  }
   0xe   :  { %922 = dma.done.wait [#allocation3], 1024  }
   0xf   :  { %923 = vsyncadd [#allocation3], 4294966272 }
  0x10   :  { %924 = dma.done.wait [#allocation6], 2048  }
  0x11   :  { %925 = vsyncadd [#allocation6], 4294965248 }
  0x12   :  { %926 = dma.done.wait [#allocation9], 1024  }
  0x13   :  { %927 = vsyncadd [#allocation9], 4294966272  ;;  %v749_v0 = vld [vmem:[#allocation5 + $0x38] sm:$0xff]  ;;  %v748_v1 = vld [vmem:[#allocation5 + $0x30] sm:$0xff]  ;;  %s591_s26 = sshll.u32 %s1046_s7, 4  ;;  %s937_s27 = smov 128   ;;  %s592_s26 = int_to_ptr.hbm [resolvable:$true] %s591_s26 }
  0x14   :  { %222 = vmatpush.bf16.msra.mxu0 %v749_v0  ;;  %766 = vmatpush.bf16.msra.mxu3 %v749_v0  ;;  %v747_v2 = vld [vmem:[#allocation5 + $0x28] sm:$0xff]  ;;  %v746_v3 = vld [vmem:[#allocation5 + $0x20] sm:$0xff]  ;;  %v745_v4 = vld [vmem:[#allocation5 + $0x18] sm:$0xff]  ;;  %s938_s28 = smov 8  }
  0x15   :  { %v744_v5 = vld [vmem:[#allocation5 + $0x10] sm:$0xff]  ;;  %v743_v6 = vld [vmem:[#allocation5 + $0x8] sm:$0xff]  ;;  %v742_v7 = vld [vmem:[#allocation5] sm:$0xff] }
  0x16   :  { %v734_v8 = vld [vmem:[#allocation2] sm:$0xff]  ;;  %v740_v9 = vld [vmem:[#allocation2 + $0x30] sm:$0xff]  ;;  %v735_v10 = vld [vmem:[#allocation2 + $0x8] sm:$0xff] }
  0x17   :  { %v741_v11 = vld [vmem:[#allocation2 + $0x38] sm:$0xff]  ;;  %v736_v12 = vld [vmem:[#allocation2 + $0x10] sm:$0xff]  ;;  %v755_v16 = vld [vmem:[#allocation7 + $0x28] sm:$0xff] }
  0x18   :  { %223 = vmatpush.bf16.msra.mxu0 %v748_v1  ;;  %767 = vmatpush.bf16.msra.mxu3 %v748_v1  ;;  %v737_v13 = vld [vmem:[#allocation2 + $0x18] sm:$0xff]  ;;  %v756_v15 = vld [vmem:[#allocation7 + $0x30] sm:$0xff]  ;;  %v754_v17 = vld [vmem:[#allocation7 + $0x20] sm:$0xff] }
  0x19   :  { %v757_v14 = vld [vmem:[#allocation7 + $0x38] sm:$0xff]  ;;  %v738_v18 = vld [vmem:[#allocation2 + $0x20] sm:$0xff]  ;;  %v739_v19 = vld [vmem:[#allocation2 + $0x28] sm:$0xff] }
  0x1a   :  { %363 = vmatpush.bf16.msra.mxu1 %v757_v14  ;;  %v753_v20 = vld [vmem:[#allocation7 + $0x18] sm:$0xff]  ;;  %v752_v21 = vld [vmem:[#allocation7 + $0x10] sm:$0xff]  ;;  %v751_v22 = vld [vmem:[#allocation7 + $0x8] sm:$0xff] }
  0x1b   :  { %v750_v23 = vld [vmem:[#allocation7] sm:$0xff] }
  0x1c   :  { %224 = vmatpush.bf16.msra.mxu0 %v747_v2  ;;  %768 = vmatpush.bf16.msra.mxu3 %v747_v2  ;;  %v994_v25 = vld [vmem:[%s1041_s2] ss:$0 sm:$0xff] }
  0x1e   :  { %364 = vmatpush.bf16.msra.mxu1 %v756_v15 }
  0x20   :  { %225 = vmatpush.bf16.msra.mxu0 %v746_v3  ;;  %769 = vmatpush.bf16.msra.mxu3 %v746_v3  ;;  %v765_v3 = vld [vmem:[#allocation8 + $0x38] sm:$0xff] }
  0x21   :  { %504 = vmatpush.bf16.msra.mxu2 %v765_v3 }
  0x22   :  { %365 = vmatpush.bf16.msra.mxu1 %v755_v16 }
  0x24   :  { %226 = vmatpush.bf16.msra.mxu0 %v745_v4  ;;  %770 = vmatpush.bf16.msra.mxu3 %v745_v4 }
  0x26   :  { %366 = vmatpush.bf16.msra.mxu1 %v754_v17 }
  0x28   :  { %227 = vmatpush.bf16.msra.mxu0 %v744_v5  ;;  %771 = vmatpush.bf16.msra.mxu3 %v744_v5  ;;  %v764_v5 = vld [vmem:[#allocation8 + $0x30] sm:$0xff] }
  0x29   :  { %505 = vmatpush.bf16.msra.mxu2 %v764_v5 }
  0x2a   :  { %367 = vmatpush.bf16.msra.mxu1 %v753_v20 }
  0x2c   :  { %228 = vmatpush.bf16.msra.mxu0 %v743_v6  ;;  %772 = vmatpush.bf16.msra.mxu3 %v743_v6  ;;  %v763_v6 = vld [vmem:[#allocation8 + $0x28] sm:$0xff] }
  0x2d   :  { %506 = vmatpush.bf16.msra.mxu2 %v763_v6 }
  0x2e   :  { %368 = vmatpush.bf16.msra.mxu1 %v752_v21 }
  0x30   :  { %229 = vmatpush.bf16.msra.mxu0 %v742_v7  ;;  %773 = vmatpush.bf16.msra.mxu3 %v742_v7 }
  0x32   :  { %369 = vmatpush.bf16.msra.mxu1 %v751_v22 }
  0x33   :  { %230 = vmatmul.bf16.vlgmr.msra.gmra.mxu0 %v734_v8  ;;  %260 = vmatmul.bf16.vlgmr.msra.gmra.mxu3 %v740_v9 }
  0x34   :  { %774 = vmatpush.bf16.msrb.mxu3 %v757_v14 }
  0x36   :  { %370 = vmatpush.bf16.msra.mxu1 %v750_v23 }
  0x38   :  { %775 = vmatpush.bf16.msrb.mxu3 %v756_v15 }
  0x3c   :  { %776 = vmatpush.bf16.msrb.mxu3 %v755_v16 }
  0x40   :  { %777 = vmatpush.bf16.msrb.mxu3 %v754_v17 }
  0x43   :  { %235 = vmatmul.bf16.gmra.mxu0 %v735_v10  ;;  %265 = vmatmul.bf16.gmra.mxu3 %v741_v11  ;;  %v762_v10 = vld [vmem:[#allocation8 + $0x20] sm:$0xff] }
  0x44   :  { %778 = vmatpush.bf16.msrb.mxu3 %v753_v20  ;;  %507 = vmatpush.bf16.msra.mxu2 %v762_v10 }
  0x48   :  { %779 = vmatpush.bf16.msrb.mxu3 %v752_v21  ;;  %v761_v21 = vld [vmem:[#allocation8 + $0x18] sm:$0xff] }
  0x49   :  { %508 = vmatpush.bf16.msra.mxu2 %v761_v21 }
  0x4c   :  { %780 = vmatpush.bf16.msrb.mxu3 %v751_v22  ;;  %v760_v22 = vld [vmem:[#allocation8 + $0x10] sm:$0xff] }
  0x4d   :  { %509 = vmatpush.bf16.msra.mxu2 %v760_v22 }
  0x50   :  { %781 = vmatpush.bf16.msrb.mxu3 %v750_v23  ;;  %v759_v23 = vld [vmem:[#allocation8 + $0x8] sm:$0xff] }
  0x51   :  { %510 = vmatpush.bf16.msra.mxu2 %v759_v23 }
  0x53   :  { %240 = vmatmul.bf16.gmra.mxu0 %v736_v12 }
  0x54   :  { %782 = vmatpush.bf16.msra.mxu3 %v765_v3 }
  0x58   :  { %783 = vmatpush.bf16.msra.mxu3 %v764_v5 }
  0x5c   :  { %784 = vmatpush.bf16.msra.mxu3 %v763_v6 }
  0x60   :  { %785 = vmatpush.bf16.msra.mxu3 %v762_v10 }
  0x63   :  { %245 = vmatmul.bf16.gmra.mxu0 %v737_v13 }
  0x64   :  { %786 = vmatpush.bf16.msra.mxu3 %v761_v21 }
  0x68   :  { %787 = vmatpush.bf16.msra.mxu3 %v760_v22 }
  0x6c   :  { %788 = vmatpush.bf16.msra.mxu3 %v759_v23 }
  0x73   :  { %250 = vmatmul.bf16.gmra.mxu0 %v738_v18 }
  0x83   :  { %255 = vmatmul.bf16.gmra.mxu0 %v739_v19 }
  0xb0   :  { %v231_v24 = vpop.f32.mrf.mxu0 }
  0xb1   :  { %v232_v27 = vadd.f32 %v994_v25, %v231_v24  ;;  %v758_v24 = vld [vmem:[#allocation8] sm:$0xff] }
  0xb2   :  { %511 = vmatpush.bf16.msra.mxu2 %v758_v24  ;;  %789 = vmatpush.bf16.msra.mxu3 %v758_v24 }
  0xb3   :  { %v271_v30 = vmax.f32 %v232_v27, 0.0 }
  0xb6   :  { %v261_v26 = vpop.f32.mrf.mxu3 }
  0xb7   :  { %v262_v32 = vadd.f32 %v994_v25, %v261_v26 }
  0xb8   :  { %v233_v28 = vpop.f32.mrf.mxu0 }
  0xb9   :  { %v234_v29 = vadd.f32 %v994_v25, %v233_v28  ;;  %v283_v35 = vmax.f32 %v262_v32, 0.0 }
  0xbb   :  { %v272_v31 = vmax.f32 %v234_v29, 0.0 }
  0xbd   :  { %v287_v33 = vpack.c.bf16 %v272_v31, %v271_v30 }
  0xbe   :  { %v263_v34 = vpop.f32.mrf.mxu3 }
  0xbf   :  { %371 = vmatmul.bf16.vlgmr.msra.gmra.mxu1 %v287_v33  ;;  %v264_v36 = vadd.f32 %v994_v25, %v263_v34 }
  0xc0   :  { %v236_v37 = vpop.f32.mrf.mxu0 }
  0xc1   :  { %v284_v38 = vmax.f32 %v264_v36, 0.0  ;;  %v237_v41 = vadd.f32 %v994_v25, %v236_v37 }
  0xc3   :  { %v293_v39 = vpack.c.bf16 %v284_v38, %v283_v35  ;;  %v273_v44 = vmax.f32 %v237_v41, 0.0 }
  0xc5   :  { %401 = vmatmul.bf16.vlgmr.msrb.gmra.mxu3 %v293_v39 }
  0xc6   :  { %v266_v40 = vpop.f32.mrf.mxu3 }
  0xc7   :  { %v267_v46 = vadd.f32 %v994_v25, %v266_v40 }
  0xc8   :  { %v238_v42 = vpop.f32.mrf.mxu0 }
  0xc9   :  { %v239_v43 = vadd.f32 %v994_v25, %v238_v42  ;;  %v285_v49 = vmax.f32 %v267_v46, 0.0 }
  0xcb   :  { %v274_v45 = vmax.f32 %v239_v43, 0.0 }
  0xcd   :  { %v288_v47 = vpack.c.bf16 %v274_v45, %v273_v44 }
  0xce   :  { %v268_v48 = vpop.f32.mrf.mxu3 }
  0xcf   :  { %376 = vmatmul.bf16.gmra.mxu1 %v288_v47  ;;  %v269_v50 = vadd.f32 %v994_v25, %v268_v48 }
  0xd0   :  { %v241_v51 = vpop.f32.mrf.mxu0 }
  0xd1   :  { %v286_v52 = vmax.f32 %v269_v50, 0.0  ;;  %v242_v54 = vadd.f32 %v994_v25, %v241_v51 }
  0xd3   :  { %v294_v53 = vpack.c.bf16 %v286_v52, %v285_v49  ;;  %v275_v57 = vmax.f32 %v242_v54, 0.0 }
  0xd5   :  { %406 = vmatmul.bf16.gmra.mxu3 %v294_v53 }
  0xd8   :  { %v243_v55 = vpop.f32.mrf.mxu0 }
  0xd9   :  { %v244_v56 = vadd.f32 %v994_v25, %v243_v55 }
  0xdb   :  { %v276_v58 = vmax.f32 %v244_v56, 0.0 }
  0xdd   :  { %v289_v59 = vpack.c.bf16 %v276_v58, %v275_v57 }
  0xdf   :  { %381 = vmatmul.bf16.gmra.mxu1 %v289_v59 }
  0xe0   :  { %v246_v60 = vpop.f32.mrf.mxu0 }
  0xe1   :  { %v247_v61 = vadd.f32 %v994_v25, %v246_v60 }
  0xe3   :  { %v277_v0 = vmax.f32 %v247_v61, 0.0 }
  0xe8   :  { %v248_v62 = vpop.f32.mrf.mxu0 }
  0xe9   :  { %v249_v63 = vadd.f32 %v994_v25, %v248_v62 }
  0xeb   :  { %v278_v1 = vmax.f32 %v249_v63, 0.0 }
  0xed   :  { %v290_v2 = vpack.c.bf16 %v278_v1, %v277_v0 }
  0xef   :  { %386 = vmatmul.bf16.gmra.mxu1 %v290_v2 }
  0xf0   :  { %v251_v4 = vpop.f32.mrf.mxu0 }
  0xf1   :  { %v252_v7 = vadd.f32 %v994_v25, %v251_v4 }
  0xf3   :  { %v279_v11 = vmax.f32 %v252_v7, 0.0 }
  0xf8   :  { %v253_v8 = vpop.f32.mrf.mxu0 }
  0xf9   :  { %v254_v9 = vadd.f32 %v994_v25, %v253_v8 }
  0xfb   :  { %v280_v12 = vmax.f32 %v254_v9, 0.0 }
  0xfd   :  { %v291_v13 = vpack.c.bf16 %v280_v12, %v279_v11 }
  0xff   :  { %391 = vmatmul.bf16.gmra.mxu1 %v291_v13 }
 0x100   :  { %v256_v14 = vpop.f32.mrf.mxu0 }
 0x101   :  { %v257_v15 = vadd.f32 %v994_v25, %v256_v14 }
 0x103   :  { %v281_v18 = vmax.f32 %v257_v15, 0.0 }
 0x108   :  { %v258_v16 = vpop.f32.mrf.mxu0 }
 0x109   :  { %v259_v17 = vadd.f32 %v994_v25, %v258_v16  ;;  %v800_v25 = vld [vmem:[%s1043_s4] ss:$0 sm:$0xff] }
 0x10b   :  { %v282_v19 = vmax.f32 %v259_v17, 0.0 }
 0x10d   :  { %v292_v20 = vpack.c.bf16 %v282_v19, %v281_v18  ;;  %v1018_v18 = vld [vmem:[%s1045_s6] ss:$0 sm:$0xff]  ;;  %s936_s6 = smov [#allocation10]  }
 0x10e   :  { %s589_s23 = sshll.u32 %s936_s6, 4  ;;  %s590_s23 = int_to_ptr.vmem [resolvable:$true] %s589_s23 }
 0x10f   :  { %396 = vmatmul.bf16.gmra.mxu1 %v292_v20 }
 0x13c   :  { %v372_v26 = vpop.f32.mrf.mxu1 }
 0x13d   :  { %v373_v27 = vadd.f32 %v800_v25, %v372_v26 }
 0x13f   :  { %v412_v30 = vmax.f32 %v373_v27, 0.0 }
 0x144   :  { %v374_v28 = vpop.f32.mrf.mxu1 }
 0x145   :  { %v375_v29 = vadd.f32 %v800_v25, %v374_v28 }
 0x147   :  { %v413_v31 = vmax.f32 %v375_v29, 0.0 }
 0x148   :  { %v402_v32 = vpop.f32.mrf.mxu3 }
 0x149   :  { %v428_v33 = vpack.c.bf16 %v413_v31, %v412_v30  ;;  %v403_v35 = vadd.f32 %v800_v25, %v402_v32 }
 0x14b   :  { %512 = vmatmul.bf16.vlgmr.msra.gmra.mxu2 %v428_v33  ;;  %v424_v37 = vmax.f32 %v403_v35, 0.0 }
 0x14c   :  { %v377_v34 = vpop.f32.mrf.mxu1 }
 0x14d   :  { %v378_v39 = vadd.f32 %v800_v25, %v377_v34 }
 0x14f   :  { %v414_v44 = vmax.f32 %v378_v39, 0.0 }
 0x150   :  { %v404_v36 = vpop.f32.mrf.mxu3 }
 0x151   :  { %v405_v38 = vadd.f32 %v800_v25, %v404_v36 }
 0x153   :  { %v425_v40 = vmax.f32 %v405_v38, 0.0 }
 0x154   :  { %v379_v41 = vpop.f32.mrf.mxu1 }
 0x155   :  { %v380_v42 = vadd.f32 %v800_v25, %v379_v41  ;;  %v434_v43 = vpack.c.bf16 %v425_v40, %v424_v37 }
 0x157   :  { %v415_v45 = vmax.f32 %v380_v42, 0.0  ;;  %542 = vmatmul.bf16.vlgmr.msra.gmra.mxu3 %v434_v43 }
 0x158   :  { %v407_v46 = vpop.f32.mrf.mxu3 }
 0x159   :  { %v429_v47 = vpack.c.bf16 %v415_v45, %v414_v44  ;;  %v408_v49 = vadd.f32 %v800_v25, %v407_v46 }
 0x15b   :  { %517 = vmatmul.bf16.gmra.mxu2 %v429_v47  ;;  %v426_v51 = vmax.f32 %v408_v49, 0.0 }
 0x15c   :  { %v382_v48 = vpop.f32.mrf.mxu1 }
 0x15d   :  { %v383_v53 = vadd.f32 %v800_v25, %v382_v48 }
 0x15f   :  { %v416_v58 = vmax.f32 %v383_v53, 0.0 }
 0x160   :  { %v409_v50 = vpop.f32.mrf.mxu3 }
 0x161   :  { %v410_v52 = vadd.f32 %v800_v25, %v409_v50 }
 0x163   :  { %v427_v54 = vmax.f32 %v410_v52, 0.0 }
 0x164   :  { %v384_v55 = vpop.f32.mrf.mxu1 }
 0x165   :  { %v385_v56 = vadd.f32 %v800_v25, %v384_v55  ;;  %v435_v57 = vpack.c.bf16 %v427_v54, %v426_v51 }
 0x167   :  { %v417_v59 = vmax.f32 %v385_v56, 0.0  ;;  %547 = vmatmul.bf16.gmra.mxu3 %v435_v57 }
 0x169   :  { %v430_v60 = vpack.c.bf16 %v417_v59, %v416_v58 }
 0x16b   :  { %522 = vmatmul.bf16.gmra.mxu2 %v430_v60 }
 0x16c   :  { %v387_v61 = vpop.f32.mrf.mxu1 }
 0x16d   :  { %v388_v62 = vadd.f32 %v800_v25, %v387_v61 }
 0x16f   :  { %v418_v1 = vmax.f32 %v388_v62, 0.0 }
 0x174   :  { %v389_v63 = vpop.f32.mrf.mxu1 }
 0x175   :  { %v390_v0 = vadd.f32 %v800_v25, %v389_v63 }
 0x177   :  { %v419_v2 = vmax.f32 %v390_v0, 0.0 }
 0x179   :  { %v431_v3 = vpack.c.bf16 %v419_v2, %v418_v1 }
 0x17b   :  { %527 = vmatmul.bf16.gmra.mxu2 %v431_v3 }
 0x17c   :  { %v392_v4 = vpop.f32.mrf.mxu1 }
 0x17d   :  { %v393_v5 = vadd.f32 %v800_v25, %v392_v4 }
 0x17f   :  { %v420_v8 = vmax.f32 %v393_v5, 0.0 }
 0x184   :  { %v394_v6 = vpop.f32.mrf.mxu1 }
 0x185   :  { %v395_v7 = vadd.f32 %v800_v25, %v394_v6 }
 0x187   :  { %v421_v9 = vmax.f32 %v395_v7, 0.0 }
 0x189   :  { %v432_v10 = vpack.c.bf16 %v421_v9, %v420_v8 }
 0x18b   :  { %532 = vmatmul.bf16.gmra.mxu2 %v432_v10 }
 0x18c   :  { %v397_v11 = vpop.f32.mrf.mxu1 }
 0x18d   :  { %v398_v12 = vadd.f32 %v800_v25, %v397_v11 }
 0x18f   :  { %v422_v15 = vmax.f32 %v398_v12, 0.0 }
 0x194   :  { %v399_v13 = vpop.f32.mrf.mxu1 }
 0x195   :  { %v400_v14 = vadd.f32 %v800_v25, %v399_v13 }
 0x197   :  { %v423_v16 = vmax.f32 %v400_v14, 0.0 }
 0x199   :  { %v433_v17 = vpack.c.bf16 %v423_v16, %v422_v15 }
 0x19b   :  { %537 = vmatmul.bf16.gmra.mxu2 %v433_v17 }
 0x1ce   :  { %v513_v19 = vpop.f32.mrf.mxu2 }
 0x1cf   :  { %v514_v20 = vadd.f32 %v1018_v18, %v513_v19 }
 0x1d1   :  { %v553_v21 = vmax.f32 %v514_v20, 0.0 }
 0x1d3   :  { %569 = vst [vmem:[#allocation10] sm:$0xff] %v553_v21 }
 0x1d6   :  { %v515_v22 = vpop.f32.mrf.mxu2 }
 0x1d7   :  { %v516_v23 = vadd.f32 %v1018_v18, %v515_v22 }
 0x1d9   :  { %v554_v24 = vmax.f32 %v516_v23, 0.0 }
 0x1da   :  { %v543_v26 = vpop.f32.mrf.mxu3 }
 0x1db   :  { %570 = vst [vmem:[#allocation10 + $0x8] sm:$0xff] %v554_v24  ;;  %v544_v25 = vadd.f32 %v1018_v18, %v543_v26 }
 0x1dd   :  { %v565_v27 = vmax.f32 %v544_v25, 0.0 }
 0x1de   :  { %v518_v28 = vpop.f32.mrf.mxu2 }
 0x1df   :  { %v519_v29 = vadd.f32 %v1018_v18, %v518_v28  ;;  %581 = vst [vmem:[#allocation10 + $0x60] sm:$0xff] %v565_v27 }
 0x1e1   :  { %v555_v30 = vmax.f32 %v519_v29, 0.0 }
 0x1e2   :  { %v545_v31 = vpop.f32.mrf.mxu3 }
 0x1e3   :  { %571 = vst [vmem:[#allocation10 + $0x10] sm:$0xff] %v555_v30  ;;  %v546_v32 = vadd.f32 %v1018_v18, %v545_v31 }
 0x1e5   :  { %v566_v33 = vmax.f32 %v546_v32, 0.0 }
 0x1e6   :  { %v520_v34 = vpop.f32.mrf.mxu2 }
 0x1e7   :  { %v521_v35 = vadd.f32 %v1018_v18, %v520_v34  ;;  %582 = vst [vmem:[#allocation10 + $0x68] sm:$0xff] %v566_v33 }
 0x1e9   :  { %v556_v36 = vmax.f32 %v521_v35, 0.0 }
 0x1ea   :  { %v548_v37 = vpop.f32.mrf.mxu3 }
 0x1eb   :  { %572 = vst [vmem:[#allocation10 + $0x18] sm:$0xff] %v556_v36  ;;  %v549_v38 = vadd.f32 %v1018_v18, %v548_v37 }
 0x1ed   :  { %v567_v39 = vmax.f32 %v549_v38, 0.0 }
 0x1ee   :  { %v523_v40 = vpop.f32.mrf.mxu2 }
 0x1ef   :  { %v524_v41 = vadd.f32 %v1018_v18, %v523_v40  ;;  %583 = vst [vmem:[#allocation10 + $0x70] sm:$0xff] %v567_v39 }
 0x1f1   :  { %v557_v42 = vmax.f32 %v524_v41, 0.0 }
 0x1f2   :  { %v550_v43 = vpop.f32.mrf.mxu3 }
 0x1f3   :  { %573 = vst [vmem:[#allocation10 + $0x20] sm:$0xff] %v557_v42  ;;  %v551_v44 = vadd.f32 %v1018_v18, %v550_v43 }
 0x1f5   :  { %v568_v45 = vmax.f32 %v551_v44, 0.0 }
 0x1f6   :  { %v525_v46 = vpop.f32.mrf.mxu2 }
 0x1f7   :  { %v526_v47 = vadd.f32 %v1018_v18, %v525_v46  ;;  %584 = vst [vmem:[#allocation10 + $0x78] sm:$0xff] %v568_v45 }
 0x1f9   :  { %v558_v48 = vmax.f32 %v526_v47, 0.0 }
 0x1fb   :  { %574 = vst [vmem:[#allocation10 + $0x28] sm:$0xff] %v558_v48 }
 0x1fe   :  { %v528_v49 = vpop.f32.mrf.mxu2 }
 0x1ff   :  { %v529_v50 = vadd.f32 %v1018_v18, %v528_v49 }
 0x201   :  { %v559_v51 = vmax.f32 %v529_v50, 0.0 }
 0x203   :  { %575 = vst [vmem:[#allocation10 + $0x30] sm:$0xff] %v559_v51 }
 0x206   :  { %v530_v52 = vpop.f32.mrf.mxu2 }
 0x207   :  { %v531_v53 = vadd.f32 %v1018_v18, %v530_v52 }
 0x209   :  { %v560_v54 = vmax.f32 %v531_v53, 0.0 }
 0x20b   :  { %576 = vst [vmem:[#allocation10 + $0x38] sm:$0xff] %v560_v54 }
 0x20e   :  { %v533_v55 = vpop.f32.mrf.mxu2 }
 0x20f   :  { %v534_v56 = vadd.f32 %v1018_v18, %v533_v55 }
 0x211   :  { %v561_v57 = vmax.f32 %v534_v56, 0.0 }
 0x213   :  { %577 = vst [vmem:[#allocation10 + $0x40] sm:$0xff] %v561_v57 }
 0x216   :  { %v535_v58 = vpop.f32.mrf.mxu2 }
 0x217   :  { %v536_v59 = vadd.f32 %v1018_v18, %v535_v58 }
 0x219   :  { %v562_v60 = vmax.f32 %v536_v59, 0.0 }
 0x21b   :  { %578 = vst [vmem:[#allocation10 + $0x48] sm:$0xff] %v562_v60 }
 0x21e   :  { %v538_v61 = vpop.f32.mrf.mxu2 }
 0x21f   :  { %v539_v62 = vadd.f32 %v1018_v18, %v538_v61 }
 0x221   :  { %v563_v63 = vmax.f32 %v539_v62, 0.0 }
 0x223   :  { %579 = vst [vmem:[#allocation10 + $0x50] sm:$0xff] %v563_v63 }
 0x226   :  { %v540_v0 = vpop.f32.mrf.mxu2 }
 0x227   :  { %v541_v1 = vadd.f32 %v1018_v18, %v540_v0 }
 0x229   :  { %v564_v2 = vmax.f32 %v541_v1, 0.0 }
 0x22b   :  { %580 = vst [vmem:[#allocation10 + $0x58] sm:$0xff] %v564_v2 }
 0x22c   :  { %597 = dma.vmem_to_hbm [thread:$0]  %s590_s23, 2048, %s592_s26, [#allocation4], %s937_s27, %s937_s27, %s938_s28  }
 0x22d   :  { %928 = dma.done.wait [#allocation4], 2048  }
 0x22e   :  { %929 = vsyncadd [#allocation4], 4294965248 }
 0x22f   :  { %602 = vsyncpa [#allocation3], 1 }
 0x230   :  { %603 = vsyncpa [#allocation6], 1 }
 0x231   :  { %604 = vsyncpa [#allocation9], 1 }
 0x232   :  { %605 = vsyncpa [#allocation4], 1 }

</bundles_post_ra>
